<compile_context>
chip_gen: v5e
topology: v5e:2x2
jax: 0.10.0
libtpu: 0.0.40
codegen_flags: <defaults>
</compile_context>

<pallas_src>
from functools import partial

import jax
import jax.numpy as jnp
from jax.experimental import pallas as pl
from jax.experimental.pallas import tpu as pltpu

HIDDEN_PAD = 128   # pad hidden dim to a full lane width (exact; see prepare_params)
MAX_TM = 512       # max batch-tile rows; safe for v5e/v6e/v7x default VMEM budgets


def _ae_kernel(x_ref, w1_ref, b1_ref, w2_ref, b2_ref, out_ref):
    # Fused f32 -> bf16 cast of the input tile (VPU work, hidden under DMA).
    x = x_ref[...].astype(jnp.bfloat16)
    # Encoder: h = relu(x @ W1 + b1)   (bf16 MXU inputs, f32 accumulation)
    h = jnp.dot(x, w1_ref[...], preferred_element_type=jnp.float32)
    h = jnp.maximum(h + b1_ref[...], 0.0)                     # f32 epilogue
    # Decoder: y = sigmoid(h @ W2 + b2)
    y = jnp.dot(h.astype(jnp.bfloat16), w2_ref[...],
                preferred_element_type=jnp.float32)
    y = y + b2_ref[...]
    # sigmoid = 1 / (1 + exp(-y)) with exp and reciprocal both on the EUP slot.
    out_ref[...] = pl.reciprocal(1.0 + jnp.exp(-y), approx=True).astype(out_ref.dtype)


def prepare_params(params):
    """One-time layout work (hoisted out of the hot path).

    Transposes torch-convention weights, zero-pads hidden 32->128 (exact:
    ReLU of the zero encoder columns is 0 and the zero decoder rows contribute
    nothing), and casts matmul operands to bf16. Biases stay f32.
    """
    hidden, in_dim = params["w_enc"].shape
    w1 = params["w_enc"].T                                   # [in_dim, hidden]
    w2 = params["w_dec"].T                                   # [hidden, in_dim]
    hp = max(HIDDEN_PAD, hidden)
    w1p = jnp.zeros((in_dim, hp), jnp.float32).at[:, :hidden].set(w1)
    b1p = jnp.zeros((1, hp), jnp.float32).at[:, :hidden].set(params["b_enc"])
    w2p = jnp.zeros((hp, in_dim), jnp.float32).at[:hidden, :].set(w2)
    b2p = params["b_dec"].reshape(1, in_dim).astype(jnp.float32)
    return {
        "w1": w1p.astype(jnp.bfloat16),
        "b1": b1p,
        "w2": w2p.astype(jnp.bfloat16),
        "b2": b2p,
        "in_dim": in_dim,
        "hidden_pad": hp,
    }


def _choose_tm(batch):
    """Batch-tile rows.

    Small batches: one grid step (per-step overhead ~0.35us would dominate).
    Otherwise: target >= 8 grid steps so each v7x TensorCore gets >= 4
    pipelined steps (and v6e/v5e hide the prologue/epilogue DMAs), tile rows a
    multiple of 8 (sublane), clamped to [128, MAX_TM].
    """
    if batch <= 256:
        return batch
    tm = -(-batch // 8)            # cdiv(batch, 8) -> ~8 grid steps
    tm = -(-tm // 8) * 8           # round up to sublane multiple
    return max(128, min(MAX_TM, tm))


@partial(jax.jit, static_argnames=("in_dim", "hidden_pad", "out_dtype"))
def _ae_forward(x_nchw, w1, b1, w2, b2, *, in_dim, hidden_pad, out_dtype):
    B = x_nchw.shape[0]
    x_flat = x_nchw.reshape(B, in_dim)          # stays f32; cast fused in-kernel
    tm = _choose_tm(B)
    grid = (pl.cdiv(B, tm),)

    out_bytes = jnp.dtype(out_dtype).itemsize
    cost = pl.CostEstimate(
        flops=4 * B * in_dim * hidden_pad,                    # two matmuls
        transcendentals=B * in_dim,                           # sigmoid exp
        bytes_accessed=(B * in_dim * 4                        # x (f32 in)
                        + B * in_dim * out_bytes              # output
                        + 2 * in_dim * hidden_pad * 2         # W1 + W2 (bf16)
                        + (hidden_pad + in_dim) * 4),         # biases (f32)
    )

    # Weights/biases use constant index maps so they stay VMEM-resident across
    # all grid steps.  (TODO(synk): pipeline_mode=pl.Buffered(1) on the resident
    # operands would reclaim ~0.5 MiB of redundant double-buffer VMEM.)
    out_flat = pl.pallas_call(
        _ae_kernel,
        out_shape=jax.ShapeDtypeStruct((B, in_dim), out_dtype),
        grid_spec=pltpu.PrefetchScalarGridSpec(
            num_scalar_prefetch=0,
            grid=grid,
            in_specs=[
                pl.BlockSpec((tm, in_dim), lambda i: (i, 0)),          # x tile (f32)
                pl.BlockSpec((in_dim, hidden_pad), lambda i: (0, 0)),  # W1 (resident)
                pl.BlockSpec((1, hidden_pad), lambda i: (0, 0)),       # b1 (resident)
                pl.BlockSpec((hidden_pad, in_dim), lambda i: (0, 0)),  # W2 (resident)
                pl.BlockSpec((1, in_dim), lambda i: (0, 0)),           # b2 (resident)
            ],
            out_specs=pl.BlockSpec((tm, in_dim), lambda i: (i, 0)),
        ),
        compiler_params=pltpu.CompilerParams(
            dimension_semantics=("parallel",),   # shards batch tiles across TCs on v7x
        ),
        cost_estimate=cost,
    )(x_flat, w1, b1, w2, b2)

    return out_flat.reshape(x_nchw.shape)


def autoencoder_forward(x_nchw, prepped, out_dtype=jnp.bfloat16):
    """Fused encode->decode forward. x_nchw: [B, C, H, W] float32."""
    return _ae_forward(
        x_nchw, prepped["w1"], prepped["b1"], prepped["w2"], prepped["b2"],
        in_dim=prepped["in_dim"], hidden_pad=prepped["hidden_pad"],
        out_dtype=out_dtype)


def init_params(key, in_dim, hidden):
    """Deterministic synthetic parameters with torch Linear shape conventions."""
    k1, k2, k3, k4 = jax.random.split(key, 4)
    s_enc = 1.0 / jnp.sqrt(in_dim)
    s_dec = 1.0 / jnp.sqrt(hidden)
    return {
        "w_enc": jax.random.uniform(k1, (hidden, in_dim), jnp.float32, -s_enc, s_enc),
        "b_enc": jax.random.uniform(k2, (hidden,), jnp.float32, -s_enc, s_enc),
        "w_dec": jax.random.uniform(k3, (in_dim, hidden), jnp.float32, -s_dec, s_dec),
        "b_dec": jax.random.uniform(k4, (in_dim,), jnp.float32, -s_dec, s_dec),
    }


def _reference(x, params):
    B = x.shape[0]
    x_flat = x.reshape(B, -1)
    h = jnp.maximum(x_flat @ params["w_enc"].T + params["b_enc"], 0.0)
    y = jax.nn.sigmoid(h @ params["w_dec"].T + params["b_dec"])
    return y.reshape(x.shape)


if __name__ == "__main__":
    C, H, W = 4, 16, 16
    in_dim = C * H * W          # 1024
    hidden = 32

    key = jax.random.PRNGKey(0)
    k_x, k_p, k_x2 = jax.random.split(key, 3)
    params = init_params(k_p, in_dim, hidden)
    prepped = prepare_params(params)   # hoisted layout work (transpose/pad/bf16)

    # Small demo batch (single grid step path), bf16 output.
    B = 2
    x = jax.random.normal(k_x, (B, C, H, W), dtype=jnp.float32)
    out = autoencoder_forward(x, prepped)
    jax.block_until_ready(out)
    ref = _reference(x, params)
    assert out.shape == (B, C, H, W)
    assert out.dtype == jnp.bfloat16
    # bf16 matmul inputs/output -> loosened tolerance vs. f32 reference.
    assert jnp.allclose(out.astype(jnp.float32), ref, atol=2e-2, rtol=2e-2)

    # f32-output path (matches original module dtype exactly).
    out_f32 = autoencoder_forward(x, prepped, out_dtype=jnp.float32)
    jax.block_until_ready(out_f32)
    assert out_f32.dtype == jnp.float32
    assert jnp.allclose(out_f32, ref, atol=2e-2, rtol=2e-2)

    # Larger batch exercising the pipelined path (TM=128, grid=8).
    B2 = 1024
    x2 = jax.random.normal(k_x2, (B2, C, H, W), dtype=jnp.float32)
    out2 = autoencoder_forward(x2, prepped)
    jax.block_until_ready(out2)
    ref2 = _reference(x2, params)
    assert out2.shape == (B2, C, H, W)
    assert jnp.allclose(out2.astype(jnp.float32), ref2, atol=2e-2, rtol=2e-2)

    print("KERNEL_OK")
</pallas_src>

<mosaic_0001>
module attributes {stable_mosaic.version = 11 : i64} {
  func.func @_ae_kernel(%arg0: i32, %arg1: memref<2x1024xf32, #tpu.memory_space<vmem>>, %arg2: memref<1024x128xbf16, #tpu.memory_space<vmem>>, %arg3: memref<1x128xf32, #tpu.memory_space<vmem>>, %arg4: memref<128x1024xbf16, #tpu.memory_space<vmem>>, %arg5: memref<1x1024xf32, #tpu.memory_space<vmem>>, %arg6: memref<2x1024xbf16, #tpu.memory_space<vmem>>) attributes {dimension_semantics = [#tpu.dimension_semantics<parallel>], iteration_bounds = array<i64: 1>, scalar_prefetch = 0 : i64, scratch_operands = 0 : i64, tpu.core_type = #tpu.core_type<tc>, window_params = [{transform_indices = @transform_0, window_bounds = array<i64: 2, 1024>}, {pipeline_mode = #tpu.pipeline_mode<synchronous>, transform_indices = @transform_1, window_bounds = array<i64: 1024, 128>}, {pipeline_mode = #tpu.pipeline_mode<synchronous>, transform_indices = @transform_2, window_bounds = array<i64: 1, 128>}, {pipeline_mode = #tpu.pipeline_mode<synchronous>, transform_indices = @transform_3, window_bounds = array<i64: 128, 1024>}, {pipeline_mode = #tpu.pipeline_mode<synchronous>, transform_indices = @transform_4, window_bounds = array<i64: 1, 1024>}, {transform_indices = @transform_5, window_bounds = array<i64: 2, 1024>}]} {
    %c0 = arith.constant 0 : index
    %c0_0 = arith.constant 0 : index
    %0 = vector.load %arg1[%c0, %c0_0] : memref<2x1024xf32, #tpu.memory_space<vmem>>, vector<2x1024xf32>
    %1 = arith.truncf %0 : vector<2x1024xf32> to vector<2x1024xbf16>
    %c0_1 = arith.constant 0 : index
    %c0_2 = arith.constant 0 : index
    %2 = vector.load %arg2[%c0_1, %c0_2] : memref<1024x128xbf16, #tpu.memory_space<vmem>>, vector<1024x128xbf16>
    %cst = arith.constant dense<0.000000e+00> : vector<2x128xf32>
    %3 = tpu.matmul %1, %2, %cst {dimension_numbers = #tpu.dot_dimension_numbers<[1], [0], [0], [1], [0, 0, 1, 1], [], []>} : vector<2x1024xbf16>, vector<1024x128xbf16>, vector<2x128xf32> -> vector<2x128xf32>
    %c0_3 = arith.constant 0 : index
    %c0_4 = arith.constant 0 : index
    %4 = vector.load %arg3[%c0_3, %c0_4] : memref<1x128xf32, #tpu.memory_space<vmem>>, vector<1x128xf32>
    %5 = vector.broadcast %4 : vector<1x128xf32> to vector<2x128xf32>
    %6 = arith.addf %3, %5 : vector<2x128xf32>
    %cst_5 = arith.constant 0.000000e+00 : f32
    %7 = vector.broadcast %cst_5 : f32 to vector<2x128xf32>
    %8 = arith.maximumf %6, %7 : vector<2x128xf32>
    %9 = arith.truncf %8 : vector<2x128xf32> to vector<2x128xbf16>
    %c0_6 = arith.constant 0 : index
    %c0_7 = arith.constant 0 : index
    %10 = vector.load %arg4[%c0_6, %c0_7] : memref<128x1024xbf16, #tpu.memory_space<vmem>>, vector<128x1024xbf16>
    %cst_8 = arith.constant dense<0.000000e+00> : vector<2x1024xf32>
    %11 = tpu.matmul %9, %10, %cst_8 {dimension_numbers = #tpu.dot_dimension_numbers<[1], [0], [0], [1], [0, 0, 1, 1], [], []>} : vector<2x128xbf16>, vector<128x1024xbf16>, vector<2x1024xf32> -> vector<2x1024xf32>
    %c0_9 = arith.constant 0 : index
    %c0_10 = arith.constant 0 : index
    %12 = vector.load %arg5[%c0_9, %c0_10] : memref<1x1024xf32, #tpu.memory_space<vmem>>, vector<1x1024xf32>
    %13 = vector.broadcast %12 : vector<1x1024xf32> to vector<2x1024xf32>
    %14 = arith.addf %11, %13 : vector<2x1024xf32>
    %cst_11 = arith.constant 0.000000e+00 : f32
    %15 = vector.broadcast %cst_11 : f32 to vector<2x1024xf32>
    %16 = arith.subf %15, %14 : vector<2x1024xf32>
    %17 = math.exp %16 : vector<2x1024xf32>
    %cst_12 = arith.constant 1.000000e+00 : f32
    %18 = vector.broadcast %cst_12 : f32 to vector<2x1024xf32>
    %19 = arith.addf %18, %17 : vector<2x1024xf32>
    %20 = tpu.reciprocal %19 {approx = true} : vector<2x1024xf32> -> vector<2x1024xf32>
    %21 = arith.truncf %20 : vector<2x1024xf32> to vector<2x1024xbf16>
    %c0_13 = arith.constant 0 : index
    %c0_14 = arith.constant 0 : index
    %22 = vector.load %arg6[%c0_13, %c0_14] : memref<2x1024xbf16, #tpu.memory_space<vmem>>, vector<2x1024xbf16>
    tpu.vector_store %arg6[%c0_13, %c0_14], %21 {strides = array<i32>} : memref<2x1024xbf16, #tpu.memory_space<vmem>>, vector<2x1024xbf16>,
    return
  }
  func.func @transform_0(%arg0: i32) -> (i32, i32) {
    %c0_i32 = arith.constant 0 : i32
    %c0_i32_0 = arith.constant 0 : i32
    return %arg0, %c0_i32 : i32, i32
  }
  func.func @transform_1(%arg0: i32) -> (i32, i32) {
    %c0_i32 = arith.constant 0 : i32
    %c0_i32_0 = arith.constant 0 : i32
    %c0_i32_1 = arith.constant 0 : i32
    return %c0_i32, %c0_i32_0 : i32, i32
  }
  func.func @transform_2(%arg0: i32) -> (i32, i32) {
    %c0_i32 = arith.constant 0 : i32
    %c0_i32_0 = arith.constant 0 : i32
    %c0_i32_1 = arith.constant 0 : i32
    return %c0_i32, %c0_i32_0 : i32, i32
  }
  func.func @transform_3(%arg0: i32) -> (i32, i32) {
    %c0_i32 = arith.constant 0 : i32
    %c0_i32_0 = arith.constant 0 : i32
    %c0_i32_1 = arith.constant 0 : i32
    return %c0_i32, %c0_i32_0 : i32, i32
  }
  func.func @transform_4(%arg0: i32) -> (i32, i32) {
    %c0_i32 = arith.constant 0 : i32
    %c0_i32_0 = arith.constant 0 : i32
    %c0_i32_1 = arith.constant 0 : i32
    return %c0_i32, %c0_i32_0 : i32, i32
  }
  func.func @transform_5(%arg0: i32) -> (i32, i32) {
    %c0_i32 = arith.constant 0 : i32
    %c0_i32_0 = arith.constant 0 : i32
    return %arg0, %c0_i32 : i32, i32
  }
}

</mosaic_0001>

<bundles_post_ra>
// kernel: _ae_forward.1
= control target key start
LH: loop header
LB: loop body
LE: loop exit
PB: predicated region body
PF: predicated region fallthrough
CT: control target
= control target key end

     0   :  { %10 = vsyncpa [#allocation3], 0  ;;  %s2096_s0 = inlined_call_operand.vmem [shape: f32[2,1024], index: 0, kind: input, shape index: {}]   ;;  %s2097_s1 = inlined_call_operand.hbm [shape: bf16[1024,128], index: 1, kind: input, shape index: {}]   ;;  %s2098_s2 = inlined_call_operand.vmem [shape: f32[1,128], index: 2, kind: input, shape index: {}]   ;;  %s2099_s3 = inlined_call_operand.hbm [shape: bf16[128,1024], index: 3, kind: input, shape index: {}]   ;;  %s2100_s4 = inlined_call_operand.vmem [shape: f32[1,1024], index: 4, kind: input, shape index: {}]   ;;  %s2101_s5 = inlined_call_operand.vmem [shape: bf16[2,1024], index: 5, kind: output, shape index: {}]  }
   0x1   :  { %s18_s20 = sshll.u32 %s2097_s1, 4  ;;  %s19_s20 = int_to_ptr.hbm [resolvable:$true] %s18_s20 }
   0x2   :  { %11 = vsyncpa [#allocation5], 0  ;;  %s2027_s21 = smov [#allocation2]   ;;  %s33_s25 = sshll.u32 %s2099_s3, 4  ;;  %s34_s25 = int_to_ptr.hbm [resolvable:$true] %s33_s25 }
   0x3   :  { %s20_s22 = sshll.u32 %s2027_s21, 4  ;;  %s2028_s26 = smov 64   ;;  %s21_s22 = int_to_ptr.vmem [resolvable:$true] %s20_s22 }
   0x4   :  { %s2029_s27 = smov 4   ;;  %s2030_s28 = smov [#allocation4]  }
   0x5   :  { %26 = dma.hbm_to_vmem [thread:$0]  %s19_s20, 8192, %s21_s22, [#allocation3], %s2028_s26, %s2028_s26, %s2029_s27  }
   0x6   :  { %s35_s29 = sshll.u32 %s2030_s28, 4  ;;  %s2031_s30 = smov 512   ;;  %s36_s29 = int_to_ptr.vmem [resolvable:$true] %s35_s29 }
   0x7   :  { %s2032_s6 = smov 32  }
   0x8   :  { %41 = dma.hbm_to_vmem [thread:$0]  %s34_s25, 8192, %s36_s29, [#allocation5], %s2031_s30, %s2031_s30, %s2032_s6  }
   0x9   :  { %2023 = dma.done.wait [#allocation3], 8192  }
   0xa   :  { %2024 = vsyncadd [#allocation3], 4294959104 }
   0xb   :  { %2025 = dma.done.wait [#allocation5], 8192  }
   0xc   :  { %2026 = vsyncadd [#allocation5], 4294959104  ;;  %v1815_v0 = vld [vmem:[#allocation2 + $0x38] sm:$0xff]  ;;  %v1814_v4 = vld [vmem:[#allocation2 + $0x30] sm:$0xff]  ;;  %vm1270_vm0 = vcmask 1042434   ;;  %vm1266_vm1 = vcmask 1040384  }
   0xd   :  { %v1823_v1 = vld [vmem:[#allocation2 + $0x78] sm:$0xff]  ;;  %599 = vmatpush.bf16.msra.mxu0 %v1815_v0  ;;  %v1822_v5 = vld [vmem:[#allocation2 + $0x70] sm:$0xff]  ;;  %v1813_v8 = vld [vmem:[#allocation2 + $0x28] sm:$0xff]  ;;  %vm1274_vm2 = vcmask 1041408   ;;  %vm1276_vm3 = vcmask 1044484   ;;  %vm1280_vm4 = vcmask 1046534  }
   0xe   :  { %v1831_v2 = vld [vmem:[#allocation2 + $0xb8] sm:$0xff]  ;;  %612 = vmatpush.bf16.msra.mxu1 %v1823_v1  ;;  %v1830_v6 = vld [vmem:[#allocation2 + $0xb0] sm:$0xff]  ;;  %v1821_v9 = vld [vmem:[#allocation2 + $0x68] sm:$0xff]  ;;  %vm1284_vm5 = vcmask 1045508   ;;  %vm1286_vm6 = vcmask 1043456  }
   0xf   :  { %v1839_v3 = vld [vmem:[#allocation2 + $0xf8] sm:$0xff]  ;;  %625 = vmatpush.bf16.msra.mxu2 %v1831_v2  ;;  %v1838_v7 = vld [vmem:[#allocation2 + $0xf0] sm:$0xff]  ;;  %v1829_v10 = vld [vmem:[#allocation2 + $0xa8] sm:$0xff] }
  0x10   :  { %638 = vmatpush.bf16.msra.mxu3 %v1839_v3  ;;  %v1837_v11 = vld [vmem:[#allocation2 + $0xe8] sm:$0xff]  ;;  %v1812_v12 = vld [vmem:[#allocation2 + $0x20] sm:$0xff]  ;;  %v52_v16 = vld [vmem:[%s2096_s0] sm:$0xff] }
  0x11   :  { %600 = vmatpush.bf16.msra.mxu0 %v1814_v4  ;;  %v1820_v13 = vld [vmem:[#allocation2 + $0x60] sm:$0xff]  ;;  %v1811_v17 = vld [vmem:[#allocation2 + $0x18] sm:$0xff]  ;;  %56 = vst [vmem:[#allocation1] ss:$4 sm:$0xff] %v52_v16  ;;  %v1810_v21 = vld [vmem:[#allocation2 + $0x10] sm:$0xff] }
  0x12   :  { %613 = vmatpush.bf16.msra.mxu1 %v1822_v5  ;;  %v1828_v14 = vld [vmem:[#allocation2 + $0xa0] sm:$0xff]  ;;  %v1819_v18 = vld [vmem:[#allocation2 + $0x58] sm:$0xff]  ;;  %v1818_v22 = vld [vmem:[#allocation2 + $0x50] sm:$0xff] }
  0x13   :  { %626 = vmatpush.bf16.msra.mxu2 %v1830_v6  ;;  %v1836_v15 = vld [vmem:[#allocation2 + $0xe0] sm:$0xff]  ;;  %v1827_v19 = vld [vmem:[#allocation2 + $0x98] sm:$0xff]  ;;  %v1826_v23 = vld [vmem:[#allocation2 + $0x90] sm:$0xff] }
  0x14   :  { %639 = vmatpush.bf16.msra.mxu3 %v1838_v7  ;;  %v1835_v20 = vld [vmem:[#allocation2 + $0xd8] sm:$0xff]  ;;  %v1834_v24 = vld [vmem:[#allocation2 + $0xd0] sm:$0xff]  ;;  %v1809_v25 = vld [vmem:[#allocation2 + $0x8] sm:$0xff] }
  0x15   :  { %601 = vmatpush.bf16.msra.mxu0 %v1813_v8  ;;  %v1817_v26 = vld [vmem:[#allocation2 + $0x48] sm:$0xff]  ;;  %v53_v29 = vld [vmem:[%s2096_s0 + $0x8] sm:$0xff]  ;;  %v1847_v34 = vld [vmem:[#allocation2 + $0x138] sm:$0xff] }
  0x16   :  { %614 = vmatpush.bf16.msra.mxu1 %v1821_v9  ;;  %v1825_v27 = vld [vmem:[#allocation2 + $0x88] sm:$0xff]  ;;  %v1808_v30 = vld [vmem:[#allocation2] sm:$0xff]  ;;  %58 = vst [vmem:[#allocation1 + $0x20] ss:$4 sm:$0xff] %v53_v29  ;;  %v1855_v35 = vld [vmem:[#allocation2 + $0x178] sm:$0xff] }
  0x17   :  { %627 = vmatpush.bf16.msra.mxu2 %v1829_v10  ;;  %v1833_v28 = vld [vmem:[#allocation2 + $0xc8] sm:$0xff]  ;;  %v1816_v31 = vld [vmem:[#allocation2 + $0x40] sm:$0xff]  ;;  %v1863_v40 = vld [vmem:[#allocation2 + $0x1b8] sm:$0xff] }
  0x18   :  { %640 = vmatpush.bf16.msra.mxu3 %v1837_v11  ;;  %v1824_v32 = vld [vmem:[#allocation2 + $0x80] sm:$0xff]  ;;  %v61_v36 = vld.sshfl [vmem:[#allocation1 + $0x10] sm:$0xff pattern:$0x73625140]  ;;  %v1871_v41 = vld [vmem:[#allocation2 + $0x1f8] sm:$0xff] }
  0x19   :  { %602 = vmatpush.bf16.msra.mxu0 %v1812_v12  ;;  %v1832_v33 = vld [vmem:[#allocation2 + $0xc0] sm:$0xff]  ;;  %v59_v37 = vld.sshfl [vmem:[#allocation1] sm:$0xff pattern:$0x73625140]  ;;  %v77_v42 = vpack.c.bf16 %v61_v36, %v61_v36  ;;  %v1846_v46 = vld [vmem:[#allocation2 + $0x130] sm:$0xff] }
  0x1a   :  { %615 = vmatpush.bf16.msra.mxu1 %v1820_v13  ;;  %v62_v38 = vld.sshfl [vmem:[#allocation1 + $0x18] sm:$0xff pattern:$0x73625140]  ;;  %v60_v39 = vld.sshfl [vmem:[#allocation1 + $0x8] sm:$0xff pattern:$0x73625140]  ;;  %v75_v43 = vpack.c.bf16 %v59_v37, %v59_v37 }
  0x1b   :  { %628 = vmatpush.bf16.msra.mxu2 %v1828_v14  ;;  %v78_v44 = vpack.c.bf16 %v62_v38, %v62_v38  ;;  %v76_v45 = vpack.c.bf16 %v60_v39, %v60_v39  ;;  %v1854_v47 = vld [vmem:[#allocation2 + $0x170] sm:$0xff]  ;;  %v1845_v50 = vld [vmem:[#allocation2 + $0x128] sm:$0xff]  ;;  %v1844_v54 = vld [vmem:[#allocation2 + $0x120] sm:$0xff] }
  0x1c   :  { %641 = vmatpush.bf16.msra.mxu3 %v1836_v15  ;;  %v1862_v48 = vld [vmem:[#allocation2 + $0x1b0] sm:$0xff]  ;;  %v1853_v51 = vld [vmem:[#allocation2 + $0x168] sm:$0xff]  ;;  %v1852_v55 = vld [vmem:[#allocation2 + $0x160] sm:$0xff] }
  0x1d   :  { %603 = vmatpush.bf16.msra.mxu0 %v1811_v17  ;;  %v1870_v49 = vld [vmem:[#allocation2 + $0x1f0] sm:$0xff]  ;;  %v1861_v52 = vld [vmem:[#allocation2 + $0x1a8] sm:$0xff]  ;;  %v1860_v56 = vld [vmem:[#allocation2 + $0x1a0] sm:$0xff] }
  0x1e   :  { %616 = vmatpush.bf16.msra.mxu1 %v1819_v18  ;;  %v1869_v53 = vld [vmem:[#allocation2 + $0x1e8] sm:$0xff]  ;;  %v1868_v57 = vld [vmem:[#allocation2 + $0x1e0] sm:$0xff]  ;;  %v1843_v58 = vld [vmem:[#allocation2 + $0x118] sm:$0xff] }
  0x1f   :  { %629 = vmatpush.bf16.msra.mxu2 %v1827_v19  ;;  %v1851_v59 = vld [vmem:[#allocation2 + $0x158] sm:$0xff]  ;;  %v1842_v62 = vld [vmem:[#allocation2 + $0x110] sm:$0xff]  ;;  %v1841_v2 = vld [vmem:[#allocation2 + $0x108] sm:$0xff] }
  0x20   :  { %642 = vmatpush.bf16.msra.mxu3 %v1835_v20  ;;  %v1859_v60 = vld [vmem:[#allocation2 + $0x198] sm:$0xff]  ;;  %v1850_v63 = vld [vmem:[#allocation2 + $0x150] sm:$0xff]  ;;  %v1849_v3 = vld [vmem:[#allocation2 + $0x148] sm:$0xff] }
  0x21   :  { %604 = vmatpush.bf16.msra.mxu0 %v1810_v21  ;;  %v1867_v61 = vld [vmem:[#allocation2 + $0x1d8] sm:$0xff]  ;;  %v1858_v0 = vld [vmem:[#allocation2 + $0x190] sm:$0xff]  ;;  %v1857_v4 = vld [vmem:[#allocation2 + $0x188] sm:$0xff] }
  0x22   :  { %617 = vmatpush.bf16.msra.mxu1 %v1818_v22  ;;  %v1866_v1 = vld [vmem:[#allocation2 + $0x1d0] sm:$0xff]  ;;  %v1865_v5 = vld [vmem:[#allocation2 + $0x1c8] sm:$0xff]  ;;  %v1840_v6 = vld [vmem:[#allocation2 + $0x100] sm:$0xff] }
  0x23   :  { %630 = vmatpush.bf16.msra.mxu2 %v1826_v23  ;;  %v1848_v7 = vld [vmem:[#allocation2 + $0x140] sm:$0xff]  ;;  %v63_v8 = vld.sshfl [vmem:[#allocation1 + $0x20] sm:$0xff pattern:$0x73625140]  ;;  %v1786_v18 = vld [vmem:[#allocation4 + $0x1c8] sm:$0xf] }
  0x24   :  { %643 = vmatpush.bf16.msra.mxu3 %v1834_v24  ;;  %v64_v9 = vld.sshfl [vmem:[#allocation1 + $0x28] sm:$0xff pattern:$0x73625140]  ;;  %v65_v15 = vld.sshfl [vmem:[#allocation1 + $0x30] sm:$0xff pattern:$0x73625140] }
  0x25   :  { %605 = vmatpush.bf16.msra.mxu0 %v1809_v25  ;;  %v1778_v10 = vld [vmem:[#allocation4 + $0x1c0] sm:$0xf]  ;;  %v1928_v13 = vld [vmem:[#allocation4 + $0x1c4] sm:$0xf]  ;;  %v1933_v19 = vld [vmem:[#allocation4 + $0x1e4] sm:$0xf0]  ;;  %v79_v25 = vpack.c.bf16 %v63_v8, %v63_v8 }
  0x26   :  { %618 = vmatpush.bf16.msra.mxu1 %v1817_v26  ;;  %v1856_v11 = vld [vmem:[#allocation2 + $0x180] sm:$0xff]  ;;  %v66_v16 = vld.sshfl [vmem:[#allocation1 + $0x38] sm:$0xff pattern:$0x73625140]  ;;  %v1929_v22 = vld [vmem:[#allocation4 + $0x1cc] sm:$0xf]  ;;  %v80_v26 = vpack.c.bf16 %v64_v9, %v64_v9 }
  0x27   :  { %631 = vmatpush.bf16.msra.mxu2 %v1825_v27  ;;  %v1932_v12 = vld [vmem:[#allocation4 + $0x1dc] sm:$0xf0]  ;;  %v1780_v14 = vld [vmem:[#allocation4 + $0x1e0] sm:$0xf0]  ;;  %v1788_v23 = vld [vmem:[#allocation4 + $0x1e8] sm:$0xf0] }
  0x28   :  { %644 = vmatpush.bf16.msra.mxu3 %v1833_v28  ;;  %v1864_v17 = vld [vmem:[#allocation2 + $0x1c0] sm:$0xff]  ;;  %v1779_v20 = vor.u32 %v1932_v12, %v1778_v10  ;;  %v1783_v21 = vor.u32 %v1928_v13, %v1780_v14  ;;  %v1925_v37 = vld [vmem:[#allocation4 + $0x1a4] sm:$0xf0]  ;;  %v1921_v38 = vld [vmem:[#allocation4 + $0x18c] sm:$0xf] }
  0x29   :  { %606 = vmatpush.bf16.msra.mxu0 %v1808_v30  ;;  %v1746_v24 = vld [vmem:[#allocation4 + $0x180] sm:$0xf]  ;;  %v1920_v28 = vld [vmem:[#allocation4 + $0x184] sm:$0xf]  ;;  %v81_v30 = vpack.c.bf16 %v65_v15, %v65_v15  ;;  %v1756_v39 = vld [vmem:[#allocation4 + $0x1a8] sm:$0xf0] }
  0x2a   :  { %619 = vmatpush.bf16.msra.mxu1 %v1816_v31  ;;  %v1924_v27 = vld [vmem:[#allocation4 + $0x19c] sm:$0xf0]  ;;  %v1748_v29 = vld [vmem:[#allocation4 + $0x1a0] sm:$0xf0]  ;;  %v82_v31 = vpack.c.bf16 %v66_v16, %v66_v16  ;;  %v1658_v8 = vld [vmem:[#allocation4 + $0xc8] sm:$0xf] }
  0x2b   :  { %632 = vmatpush.bf16.msra.mxu2 %v1824_v32  ;;  %v1787_v32 = vor.u32 %v1933_v19, %v1786_v18  ;;  %v1751_v36 = vor.u32 %v1920_v28, %v1748_v29  ;;  %v1901_v9 = vld [vmem:[#allocation4 + $0xe4] sm:$0xf0]  ;;  %v1897_v10 = vld [vmem:[#allocation4 + $0xcc] sm:$0xf]  ;;  %v1618_v14 = vld [vmem:[#allocation4 + $0x80] sm:$0xf] }
  0x2c   :  { %645 = vmatpush.bf16.msra.mxu3 %v1832_v33  ;;  %607 = vmatmul.bf16.vlgmr.msra.gmra.mxu0 %v75_v43  ;;  %v1791_v33 = vor.u32 %v1929_v22, %v1788_v23  ;;  %v1916_v43 = vld [vmem:[#allocation4 + $0x15c] sm:$0xf0]  ;;  %v1660_v12 = vld [vmem:[#allocation4 + $0xe8] sm:$0xf0]  ;;  %v1888_v16 = vld [vmem:[#allocation4 + $0x84] sm:$0xf] }
  0x2d   :  { %651 = vmatpush.bf16.msrb.mxu0 %v1847_v34  ;;  %620 = vmatmul.bf16.vlgmr.msra.gmra.mxu1 %v76_v45  ;;  %v1754_v34 = vld [vmem:[#allocation4 + $0x188] sm:$0xf]  ;;  %v1663_v13 = vor.u32 %v1897_v10, %v1660_v12  ;;  %v1892_v15 = vld [vmem:[#allocation4 + $0x9c] sm:$0xf0]  ;;  %v1620_v18 = vld [vmem:[#allocation4 + $0xa0] sm:$0xf0] }
  0x2e   :  { %664 = vmatpush.bf16.msrb.mxu1 %v1855_v35  ;;  %633 = vmatmul.bf16.vlgmr.msra.gmra.mxu2 %v77_v42  ;;  %v1747_v35 = vor.u32 %v1924_v27, %v1746_v24  ;;  %v1714_v42 = vld [vmem:[#allocation4 + $0x140] sm:$0xf]  ;;  %v1626_v19 = vld [vmem:[#allocation4 + $0x88] sm:$0xf]  ;;  %v1889_v23 = vld [vmem:[#allocation4 + $0x8c] sm:$0xf] }
  0x2f   :  { %677 = vmatpush.bf16.msrb.mxu2 %v1863_v40  ;;  %646 = vmatmul.bf16.vlgmr.msra.gmra.mxu3 %v78_v44  ;;  %v1755_v40 = vor.u32 %v1925_v37, %v1754_v34  ;;  %v1912_v44 = vld [vmem:[#allocation4 + $0x144] sm:$0xf]  ;;  %v1715_v45 = vor.u32 %v1916_v43, %v1714_v42  ;;  %v1628_v24 = vld [vmem:[#allocation4 + $0xa8] sm:$0xf0]  ;;  %v1884_v27 = vld [vmem:[#allocation4 + $0x5c] sm:$0xf0] }
  0x30   :  { %690 = vmatpush.bf16.msrb.mxu3 %v1871_v41  ;;  %v1759_v41 = vor.u32 %v1921_v38, %v1756_v39  ;;  %v1880_v28 = vld [vmem:[#allocation4 + $0x44] sm:$0xf]  ;;  %v1554_v37 = vld [vmem:[#allocation4] sm:$0xf]  ;;  %v1562_v42 = vld [vmem:[#allocation4 + $0x8] sm:$0xf] }
  0x31   :  { %652 = vmatpush.bf16.msrb.mxu0 %v1846_v46  ;;  %v1716_v46 = vld [vmem:[#allocation4 + $0x160] sm:$0xf0]  ;;  %v1876_v38 = vld [vmem:[#allocation4 + $0x1c] sm:$0xf0]  ;;  %v1877_v43 = vld [vmem:[#allocation4 + $0x24] sm:$0xf0] }
  0x32   :  { %665 = vmatpush.bf16.msrb.mxu1 %v1854_v47  ;;  %v1722_v47 = vld [vmem:[#allocation4 + $0x148] sm:$0xf]  ;;  %v1588_v29 = vld [vmem:[#allocation4 + $0x60] sm:$0xf0]  ;;  %v1772_v10 = vld [vmem:[#allocation4 + $0x1b8] sm:$0xf0] }
  0x33   :  { %678 = vmatpush.bf16.msrb.mxu2 %v1862_v48  ;;  %v1917_v48 = vld [vmem:[#allocation4 + $0x164] sm:$0xf0]  ;;  %v1591_v34 = vor.u32 %v1880_v28, %v1588_v29  ;;  %v1730_v12 = vld [vmem:[#allocation4 + $0x150] sm:$0xf]  ;;  %v1906_v28 = vld [vmem:[#allocation4 + $0x114] sm:$0xf] }
  0x34   :  { %691 = vmatpush.bf16.msrb.mxu3 %v1870_v49  ;;  %v1719_v49 = vor.u32 %v1912_v44, %v1716_v46  ;;  %v1873_v44 = vld [vmem:[#allocation4 + $0xc] sm:$0xf]  ;;  %v1555_v46 = vor.u32 %v1876_v38, %v1554_v37  ;;  %v1907_v37 = vld [vmem:[#allocation4 + $0x11c] sm:$0xf] }
  0x35   :  { %653 = vmatpush.bf16.msrb.mxu0 %v1845_v50  ;;  %v1723_v50 = vor.u32 %v1917_v48, %v1722_v47  ;;  %v1563_v48 = vor.u32 %v1877_v43, %v1562_v42  ;;  %v1708_v38 = vld [vmem:[#allocation4 + $0x138] sm:$0xf0]  ;;  %v1902_v42 = vld [vmem:[#allocation4 + $0xec] sm:$0xf0]  ;;  %v1898_v43 = vld [vmem:[#allocation4 + $0xd4] sm:$0xf] }
  0x36   :  { %666 = vmatpush.bf16.msrb.mxu1 %v1853_v51  ;;  %v1913_v51 = vld [vmem:[#allocation4 + $0x14c] sm:$0xf] }
  0x37   :  { %679 = vmatpush.bf16.msrb.mxu2 %v1861_v52  ;;  %v1724_v52 = vld [vmem:[#allocation4 + $0x168] sm:$0xf0] }
  0x38   :  { %692 = vmatpush.bf16.msrb.mxu3 %v1869_v53  ;;  %v1727_v53 = vor.u32 %v1913_v51, %v1724_v52  ;;  %v1934_v51 = vld [vmem:[#allocation4 + $0x1ec] sm:$0xf0]  ;;  %v1930_v52 = vld [vmem:[#allocation4 + $0x1d4] sm:$0xf] }
  0x39   :  { %654 = vmatpush.bf16.msrb.mxu0 %v1844_v54  ;;  %v1682_v54 = vld [vmem:[#allocation4 + $0x100] sm:$0xf] }
  0x3a   :  { %667 = vmatpush.bf16.msrb.mxu1 %v1852_v55  ;;  %v1908_v55 = vld [vmem:[#allocation4 + $0x11c] sm:$0xf0] }
  0x3b   :  { %680 = vmatpush.bf16.msrb.mxu2 %v1860_v56  ;;  %v1904_v56 = vld [vmem:[#allocation4 + $0x104] sm:$0xf] }
  0x3c   :  { %693 = vmatpush.bf16.msrb.mxu3 %v1868_v57  ;;  %v1683_v57 = vor.u32 %v1908_v55, %v1682_v54  ;;  %v1796_v54 = vld [vmem:[#allocation4 + $0x1f0] sm:$0xf0]  ;;  %v1802_v55 = vld [vmem:[#allocation4 + $0x1d8] sm:$0xf] }
  0x3d   :  { %655 = vmatpush.bf16.msrb.mxu0 %v1843_v58  ;;  %v1684_v58 = vld [vmem:[#allocation4 + $0x120] sm:$0xf0] }
  0x3e   :  { %668 = vmatpush.bf16.msrb.mxu1 %v1851_v59  ;;  %v1690_v59 = vld [vmem:[#allocation4 + $0x108] sm:$0xf] }
  0x3f   :  { %681 = vmatpush.bf16.msrb.mxu2 %v1859_v60  ;;  %v1909_v60 = vld [vmem:[#allocation4 + $0x124] sm:$0xf0] }
  0x40   :  { %694 = vmatpush.bf16.msrb.mxu3 %v1867_v61  ;;  %v1687_v61 = vor.u32 %v1904_v56, %v1684_v58  ;;  %v1935_v56 = vld [vmem:[#allocation4 + $0x1f4] sm:$0xf0] }
  0x41   :  { %656 = vmatpush.bf16.msrb.mxu0 %v1842_v62  ;;  %v1691_v62 = vor.u32 %v1909_v60, %v1690_v59  ;;  %v1803_v58 = vor.u32 %v1935_v56, %v1802_v55  ;;  %v1931_v59 = vld [vmem:[#allocation4 + $0x1dc] sm:$0xf]  ;;  %v1894_v56 = vld [vmem:[#allocation4 + $0xac] sm:$0xf0] }
  0x42   :  { %669 = vmatpush.bf16.msrb.mxu1 %v1850_v63  ;;  %v1905_v63 = vld [vmem:[#allocation4 + $0x10c] sm:$0xf]  ;;  %v1804_v60 = vld [vmem:[#allocation4 + $0x1f8] sm:$0xf0] }
  0x43   :  { %682 = vmatpush.bf16.msrb.mxu2 %v1858_v0  ;;  %v1692_v0 = vld [vmem:[#allocation4 + $0x128] sm:$0xf0] }
  0x44   :  { %695 = vmatpush.bf16.msrb.mxu3 %v1866_v1  ;;  %v1650_v1 = vld [vmem:[#allocation4 + $0xc0] sm:$0xf] }
  0x45   :  { %657 = vmatpush.bf16.msrb.mxu0 %v1841_v2  ;;  %v1695_v2 = vor.u32 %v1905_v63, %v1692_v0  ;;  %v1926_v63 = vld [vmem:[#allocation4 + $0x1ac] sm:$0xf0]  ;;  %v1922_v0 = vld [vmem:[#allocation4 + $0x194] sm:$0xf] }
  0x46   :  { %670 = vmatpush.bf16.msrb.mxu1 %v1849_v3  ;;  %v1900_v3 = vld [vmem:[#allocation4 + $0xdc] sm:$0xf0] }
  0x47   :  { %683 = vmatpush.bf16.msrb.mxu2 %v1857_v4  ;;  %v1896_v4 = vld [vmem:[#allocation4 + $0xc4] sm:$0xf] }
  0x48   :  { %696 = vmatpush.bf16.msrb.mxu3 %v1865_v5  ;;  %v1652_v5 = vld [vmem:[#allocation4 + $0xe0] sm:$0xf0] }
  0x49   :  { %658 = vmatpush.bf16.msrb.mxu0 %v1840_v6  ;;  %v1651_v6 = vor.u32 %v1900_v3, %v1650_v1  ;;  %v1764_v3 = vld [vmem:[#allocation4 + $0x1b0] sm:$0xf0] }
  0x4a   :  { %671 = vmatpush.bf16.msrb.mxu1 %v1848_v7  ;;  %v1655_v7 = vor.u32 %v1896_v4, %v1652_v5  ;;  %v1770_v4 = vld [vmem:[#allocation4 + $0x198] sm:$0xf] }
  0x4b   :  { %684 = vmatpush.bf16.msrb.mxu2 %v1856_v11  ;;  %v1659_v11 = vor.u32 %v1901_v9, %v1658_v8  ;;  %v1927_v5 = vld [vmem:[#allocation4 + $0x1b4] sm:$0xf0]  ;;  %v1923_v9 = vld [vmem:[#allocation4 + $0x19c] sm:$0xf] }
  0x4c   :  { %697 = vmatpush.bf16.msrb.mxu3 %v1864_v17  ;;  %659 = vmatmul.bf16.vlgmr.msrb.gmra.mxu0 %v79_v25  ;;  %v1619_v17 = vor.u32 %v1892_v15, %v1618_v14  ;;  %v1586_v25 = vld [vmem:[#allocation4 + $0x40] sm:$0xf]  ;;  %v1771_v8 = vor.u32 %v1927_v5, %v1770_v4  ;;  %v1914_v14 = vld [vmem:[#allocation4 + $0x154] sm:$0xf]  ;;  %v1602_v4 = vld [vmem:[#allocation4 + $0x50] sm:$0xf] }
  0x4d   :  { %1107 = vmatpush.bf16.msra.mxu0 %v1779_v20  ;;  %672 = vmatmul.bf16.vlgmr.msrb.gmra.mxu1 %v80_v26  ;;  %v1893_v20 = vld [vmem:[#allocation4 + $0xa4] sm:$0xf0]  ;;  %v1631_v26 = vor.u32 %v1889_v23, %v1628_v24  ;;  %v1886_v5 = vld [vmem:[#allocation4 + $0x6c] sm:$0xf0] }
  0x4e   :  { %1120 = vmatpush.bf16.msra.mxu1 %v1783_v21  ;;  %685 = vmatmul.bf16.vlgmr.msrb.gmra.mxu2 %v81_v30  ;;  %v1623_v21 = vor.u32 %v1888_v16, %v1620_v18  ;;  %v1627_v22 = vor.u32 %v1893_v20, %v1626_v19  ;;  %v1587_v30 = vor.u32 %v1884_v27, %v1586_v25  ;;  %v1732_v16 = vld [vmem:[#allocation4 + $0x170] sm:$0xf0]  ;;  %v1919_v18 = vld [vmem:[#allocation4 + $0x174] sm:$0xf0]  ;;  %v1910_v27 = vld [vmem:[#allocation4 + $0x12c] sm:$0xf0] }
  0x4f   :  { %698 = vmatmul.bf16.vlgmr.msrb.gmra.mxu3 %v82_v31  ;;  %1133 = vmatpush.bf16.msra.mxu2 %v1787_v32  ;;  %v1594_v31 = vld [vmem:[#allocation4 + $0x48] sm:$0xf]  ;;  %v1735_v19 = vor.u32 %v1914_v14, %v1732_v16  ;;  %v1612_v14 = vld [vmem:[#allocation4 + $0x78] sm:$0xf0] }
  0x50   :  { %1146 = vmatpush.bf16.msra.mxu3 %v1791_v33  ;;  %v1885_v32 = vld [vmem:[#allocation4 + $0x64] sm:$0xf0]  ;;  %v1881_v33 = vld [vmem:[#allocation4 + $0x4c] sm:$0xf] }
  0x51   :  { %1108 = vmatpush.bf16.msra.mxu0 %v1747_v35  ;;  %v1595_v35 = vor.u32 %v1885_v32, %v1594_v31  ;;  %v1700_v31 = vld [vmem:[#allocation4 + $0x130] sm:$0xf0]  ;;  %v1706_v32 = vld [vmem:[#allocation4 + $0x118] sm:$0xf] }
  0x52   :  { %1121 = vmatpush.bf16.msra.mxu1 %v1751_v36  ;;  %v1596_v36 = vld [vmem:[#allocation4 + $0x68] sm:$0xf0] }
  0x53   :  { %1134 = vmatpush.bf16.msra.mxu2 %v1755_v40  ;;  %v1599_v39 = vor.u32 %v1881_v33, %v1596_v36  ;;  %v1872_v40 = vld [vmem:[#allocation4 + $0x4] sm:$0xf]  ;;  %v1911_v33 = vld [vmem:[#allocation4 + $0x134] sm:$0xf0] }
  0x54   :  { %1147 = vmatpush.bf16.msra.mxu3 %v1759_v41  ;;  %v1556_v41 = vld [vmem:[#allocation4 + $0x20] sm:$0xf0]  ;;  %v1707_v36 = vor.u32 %v1911_v33, %v1706_v32 }
  0x55   :  { %1109 = vmatpush.bf16.msra.mxu0 %v1715_v45  ;;  %v1564_v45 = vld [vmem:[#allocation4 + $0x28] sm:$0xf0]  ;;  %v1559_v47 = vor.u32 %v1872_v40, %v1556_v41  ;;  %v1942_v40 = vld [vmem:[%s2098_s2] ss:$0 sm:$0xff]  ;;  %v1666_v41 = vld [vmem:[#allocation4 + $0xd0] sm:$0xf] }
  0x56   :  { %1122 = vmatpush.bf16.msra.mxu1 %v1719_v49  ;;  %v1567_v49 = vor.u32 %v1873_v44, %v1564_v45  ;;  %v1667_v44 = vor.u32 %v1902_v42, %v1666_v41  ;;  %v1668_v45 = vld [vmem:[#allocation4 + $0xf0] sm:$0xf0] }
  0x57   :  { %1135 = vmatpush.bf16.msra.mxu2 %v1723_v50  ;;  %v1794_v50 = vld [vmem:[#allocation4 + $0x1d0] sm:$0xf] }
  0x58   :  { %1148 = vmatpush.bf16.msra.mxu3 %v1727_v53  ;;  %v1795_v53 = vor.u32 %v1934_v51, %v1794_v50  ;;  %v1899_v51 = vld [vmem:[#allocation4 + $0xdc] sm:$0xf] }
  0x59   :  { %1110 = vmatpush.bf16.msra.mxu0 %v1683_v57  ;;  %v1799_v57 = vor.u32 %v1930_v52, %v1796_v54  ;;  %v1676_v52 = vld [vmem:[#allocation4 + $0xf8] sm:$0xf0] }
  0x5a   :  { %1123 = vmatpush.bf16.msra.mxu1 %v1687_v61  ;;  %v1807_v61 = vor.u32 %v1931_v59, %v1804_v60  ;;  %v1679_v55 = vor.u32 %v1899_v51, %v1676_v52 }
  0x5b   :  { %1136 = vmatpush.bf16.msra.mxu2 %v1691_v62  ;;  %v1762_v62 = vld [vmem:[#allocation4 + $0x190] sm:$0xf] }
  0x5c   :  { %1149 = vmatpush.bf16.msra.mxu3 %v1695_v2  ;;  %v1763_v2 = vor.u32 %v1926_v63, %v1762_v62  ;;  %v1895_v62 = vld [vmem:[#allocation4 + $0xb4] sm:$0xf0]  ;;  %v1891_v63 = vld [vmem:[#allocation4 + $0x9c] sm:$0xf] }
  0x5d   :  { %1111 = vmatpush.bf16.msra.mxu0 %v1651_v6 }
  0x5e   :  { %1124 = vmatpush.bf16.msra.mxu1 %v1655_v7  ;;  %v1767_v7 = vor.u32 %v1922_v0, %v1764_v3  ;;  %v1644_v3 = vld [vmem:[#allocation4 + $0xb8] sm:$0xf0] }
  0x5f   :  { %1137 = vmatpush.bf16.msra.mxu2 %v1659_v11  ;;  %v1775_v11 = vor.u32 %v1923_v9, %v1772_v10  ;;  %v1604_v9 = vld [vmem:[#allocation4 + $0x70] sm:$0xf0]  ;;  %v1610_v10 = vld [vmem:[#allocation4 + $0x58] sm:$0xf] }
  0x60   :  { %1150 = vmatpush.bf16.msra.mxu3 %v1663_v13  ;;  %v1918_v13 = vld [vmem:[#allocation4 + $0x16c] sm:$0xf0] }
  0x61   :  { %1112 = vmatpush.bf16.msra.mxu0 %v1619_v17  ;;  %v1731_v15 = vor.u32 %v1918_v13, %v1730_v12  ;;  %v1738_v17 = vld [vmem:[#allocation4 + $0x158] sm:$0xf]  ;;  %v1883_v13 = vld [vmem:[#allocation4 + $0x5c] sm:$0xf] }
  0x62   :  { %1125 = vmatpush.bf16.msra.mxu1 %v1623_v21  ;;  %v1739_v20 = vor.u32 %v1919_v18, %v1738_v17  ;;  %v1915_v21 = vld [vmem:[#allocation4 + $0x15c] sm:$0xf]  ;;  %v1887_v12 = vld [vmem:[#allocation4 + $0x74] sm:$0xf0]  ;;  %v1570_v17 = vld [vmem:[#allocation4 + $0x10] sm:$0xf] }
  0x63   :  { %1138 = vmatpush.bf16.msra.mxu2 %v1627_v22  ;;  %v1740_v22 = vld [vmem:[#allocation4 + $0x178] sm:$0xf0]  ;;  %v1611_v16 = vor.u32 %v1887_v12, %v1610_v10  ;;  %v1874_v18 = vld [vmem:[#allocation4 + $0x14] sm:$0xf] }
  0x64   :  { %1151 = vmatpush.bf16.msra.mxu3 %v1631_v26  ;;  %v1743_v24 = vor.u32 %v1915_v21, %v1740_v22  ;;  %v1698_v26 = vld [vmem:[#allocation4 + $0x110] sm:$0xf]  ;;  %v1572_v21 = vld [vmem:[#allocation4 + $0x30] sm:$0xf0]  ;;  %v1578_v22 = vld [vmem:[#allocation4 + $0x18] sm:$0xf] }
  0x65   :  { %1113 = vmatpush.bf16.msra.mxu0 %v1587_v30  ;;  %v1699_v30 = vor.u32 %v1910_v27, %v1698_v26  ;;  %v1875_v26 = vld [vmem:[#allocation4 + $0x1c] sm:$0xf] }
  0x66   :  { %1126 = vmatpush.bf16.msra.mxu1 %v1591_v34  ;;  %v1580_v27 = vld [vmem:[#allocation4 + $0x38] sm:$0xf0] }
  0x67   :  { %1139 = vmatpush.bf16.msra.mxu2 %v1595_v35  ;;  %v1703_v35 = vor.u32 %v1906_v28, %v1700_v31  ;;  %v1583_v32 = vor.u32 %v1875_v26, %v1580_v27 }
  0x68   :  { %1152 = vmatpush.bf16.msra.mxu3 %v1599_v39  ;;  %v1711_v39 = vor.u32 %v1907_v37, %v1708_v38 }
  0x69   :  { %1114 = vmatpush.bf16.msra.mxu0 %v1555_v46  ;;  %v1674_v46 = vld [vmem:[#allocation4 + $0xd8] sm:$0xf] }
  0x6a   :  { %1127 = vmatpush.bf16.msra.mxu1 %v1559_v47  ;;  %v1903_v47 = vld [vmem:[#allocation4 + $0xf4] sm:$0xf0] }
  0x6b   :  { %1140 = vmatpush.bf16.msra.mxu2 %v1563_v48  ;;  %v1675_v50 = vor.u32 %v1903_v47, %v1674_v46 }
  0x6c   :  { %1153 = vmatpush.bf16.msra.mxu3 %v1567_v49  ;;  %v1671_v49 = vor.u32 %v1898_v43, %v1668_v45 }
  0x6d   :  { %1159 = vmatpush.bf16.msrb.mxu0 %v1795_v53  ;;  %v1634_v53 = vld [vmem:[#allocation4 + $0x90] sm:$0xf] }
  0x6e   :  { %1172 = vmatpush.bf16.msrb.mxu1 %v1799_v57  ;;  %v1890_v57 = vld [vmem:[#allocation4 + $0x94] sm:$0xf]  ;;  %v1635_v59 = vor.u32 %v1894_v56, %v1634_v53 }
  0x6f   :  { %1185 = vmatpush.bf16.msrb.mxu2 %v1803_v58  ;;  %v1636_v58 = vld [vmem:[#allocation4 + $0xb0] sm:$0xf0] }
  0x70   :  { %1198 = vmatpush.bf16.msrb.mxu3 %v1807_v61  ;;  %v1639_v60 = vor.u32 %v1890_v57, %v1636_v58  ;;  %v1642_v61 = vld [vmem:[#allocation4 + $0x98] sm:$0xf] }
  0x71   :  { %1160 = vmatpush.bf16.msrb.mxu0 %v1763_v2  ;;  %v1643_v2 = vor.u32 %v1895_v62, %v1642_v61 }
  0x72   :  { %1173 = vmatpush.bf16.msrb.mxu1 %v1767_v7  ;;  %v1647_v7 = vor.u32 %v1891_v63, %v1644_v3 }
  0x73   :  { %1186 = vmatpush.bf16.msrb.mxu2 %v1771_v8  ;;  %v1882_v8 = vld [vmem:[#allocation4 + $0x54] sm:$0xf] }
  0x74   :  { %1199 = vmatpush.bf16.msrb.mxu3 %v1775_v11  ;;  %v1603_v11 = vor.u32 %v1886_v5, %v1602_v4 }
  0x75   :  { %1161 = vmatpush.bf16.msrb.mxu0 %v1731_v15  ;;  %v1607_v15 = vor.u32 %v1882_v8, %v1604_v9 }
  0x76   :  { %1174 = vmatpush.bf16.msrb.mxu1 %v1735_v19 }
  0x77   :  { %1187 = vmatpush.bf16.msrb.mxu2 %v1739_v20  ;;  %v1615_v20 = vor.u32 %v1883_v13, %v1612_v14 }
  0x78   :  { %1200 = vmatpush.bf16.msrb.mxu3 %v1743_v24  ;;  %v1879_v24 = vld [vmem:[#allocation4 + $0x34] sm:$0xf0] }
  0x79   :  { %1162 = vmatpush.bf16.msrb.mxu0 %v1699_v30  ;;  %v1579_v30 = vor.u32 %v1879_v24, %v1578_v22 }
  0x7a   :  { %1175 = vmatpush.bf16.msrb.mxu1 %v1703_v35 }
  0x7b   :  { %1188 = vmatpush.bf16.msrb.mxu2 %v1707_v36 }
  0x7c   :  { %1201 = vmatpush.bf16.msrb.mxu3 %v1711_v39 }
  0x7d   :  { %1163 = vmatpush.bf16.msrb.mxu0 %v1667_v44 }
  0x7e   :  { %1176 = vmatpush.bf16.msrb.mxu1 %v1671_v49 }
  0x7f   :  { %1189 = vmatpush.bf16.msrb.mxu2 %v1675_v50 }
  0x80   :  { %1202 = vmatpush.bf16.msrb.mxu3 %v1679_v55 }
  0x81   :  { %1164 = vmatpush.bf16.msrb.mxu0 %v1635_v59 }
  0x82   :  { %1177 = vmatpush.bf16.msrb.mxu1 %v1639_v60 }
  0x83   :  { %1190 = vmatpush.bf16.msrb.mxu2 %v1643_v2 }
  0x84   :  { %1203 = vmatpush.bf16.msrb.mxu3 %v1647_v7 }
  0x85   :  { %1165 = vmatpush.bf16.msrb.mxu0 %v1603_v11 }
  0x86   :  { %1178 = vmatpush.bf16.msrb.mxu1 %v1607_v15 }
  0x87   :  { %1191 = vmatpush.bf16.msrb.mxu2 %v1611_v16 }
  0x88   :  { %1204 = vmatpush.bf16.msrb.mxu3 %v1615_v20 }
  0x8b   :  { %1192 = vmatpush.bf16.msrb.mxu2 %v1579_v30 }
  0x8c   :  { %1205 = vmatpush.bf16.msrb.mxu3 %v1583_v32 }
  0xa9   :  { %v2075_v1 = vpop.f32.mrf.mxu0 }
  0xaa   :  { %v2077_v6 = vpop.f32.mrf.mxu1  ;;  %v609_v0 = vadd.f32 %v1942_v40, %v2075_v1  ;;  %v1878_v1 = vld [vmem:[#allocation4 + $0x2c] sm:$0xf0] }
  0xab   :  { %v1571_v28 = vor.u32 %v1878_v1, %v1570_v17 }
  0xac   :  { %v622_v19 = vadd.f32 %v2077_v6, %v609_v0 }
  0xad   :  { %1166 = vmatpush.bf16.msrb.mxu0 %v1571_v28 }
  0xb1   :  { %v2079_v23 = vpop.f32.mrf.mxu2  ;;  %v610_v29 = vpop.f32.mrf.mxu0 }
  0xb2   :  { %v2081_v25 = vpop.f32.mrf.mxu3  ;;  %v623_v34 = vpop.f32.mrf.mxu1  ;;  %v1575_v29 = vor.u32 %v1874_v18, %v1572_v21  ;;  %v635_v31 = vadd.f32 %v2079_v23, %v622_v19 }
  0xb4   :  { %1179 = vmatpush.bf16.msrb.mxu1 %v1575_v29  ;;  %v648_v6 = vadd.f32 %v2081_v25, %v635_v31  ;;  %v769_v25 = vld [vmem:[%s2100_s4] sm:$0xff] }
  0xb5   :  { %v771_v46 = vperm.slane %v769_v25, 0  ;;  %v772_v50 = vperm.slane %v769_v25, 1  ;;  %v773_v51 = vperm.slane %v769_v25, 2  ;;  %v774_v52 = vperm.slane %v769_v25, 3 }
  0xb6   :  { %v775_v3 = vperm.slane %v769_v25, 4  ;;  %v776_v4 = vperm.slane %v769_v25, 5  ;;  %v777_v16 = vperm.slane %v769_v25, 6  ;;  %v778_v17 = vperm.slane %v769_v25, 7 }
  0xb9   :  { %v636_v48 = vpop.f32.mrf.mxu2 }
  0xba   :  { %v649_v54 = vpop.f32.mrf.mxu3 }
  0xc9   :  { %v660_v33 = vpop.f32.mrf.mxu0 }
  0xca   :  { %v673_v34 = vpop.f32.mrf.mxu1  ;;  %v661_v35 = vadd.f32 %v660_v33, %v648_v6 }
  0xcc   :  { %v674_v36 = vadd.f32 %v673_v34, %v661_v35 }
  0xd1   :  { %v686_v37 = vpop.f32.mrf.mxu2  ;;  %v662_v40 = vpop.f32.mrf.mxu0 }
  0xd2   :  { %v699_v38 = vpop.f32.mrf.mxu3  ;;  %v687_v39 = vadd.f32 %v686_v37, %v674_v36  ;;  %v675_v41 = vpop.f32.mrf.mxu1 }
  0xd4   :  { %v700_v42 = vadd.f32 %v699_v38, %v687_v39 }
  0xd6   :  { %v703_v43 = vmax.f32 %v700_v42, 0.0 }
  0xd8   :  { %v704_v23 = vpack.c.bf16 %v703_v43, %v703_v43 }
  0xd9   :  { %v688_v44 = vpop.f32.mrf.mxu2 }
  0xda   :  { %v701_v45 = vpop.f32.mrf.mxu3  ;;  %1115 = vmatmul.bf16.vlgmr.msra.gmra.mxu0 %v704_v23  ;;  %1128 = vmatmul.bf16.vlgmr.msra.gmra.mxu1 %v704_v23 }
  0xdb   :  { %1141 = vmatmul.bf16.vlgmr.msra.gmra.mxu2 %v704_v23  ;;  %1154 = vmatmul.bf16.vlgmr.msra.gmra.mxu3 %v704_v23 }
  0xea   :  { %1167 = vmatmul.bf16.vlgmr.msrb.gmra.mxu0 %v704_v23  ;;  %1180 = vmatmul.bf16.vlgmr.msrb.gmra.mxu1 %v704_v23 }
  0xeb   :  { %1193 = vmatmul.bf16.vlgmr.msrb.gmra.mxu2 %v704_v23  ;;  %1206 = vmatmul.bf16.vlgmr.msrb.gmra.mxu3 %v704_v23 }
 0x157   :  { %v1116_v47 = vpop.f32.mrf.mxu0  ;;  %v1129_v48 = vpop.f32.mrf.mxu1 }
 0x158   :  { %v1117_v49 = vadd.f32 %v1116_v47, %v771_v46  ;;  %v1130_v56 = vadd.f32 %v1129_v48, %v772_v50 }
 0x15a   :  { %v1211_v53 = vsub.f32 0.0, %v1117_v49  ;;  %v1212_v0 = vsub.f32 0.0, %v1130_v56 }
 0x15c   :  { %v1219_v62 = vmul.f32 1.442695, %v1211_v53  ;;  %v1221_v9 = vmul.f32 1.442695, %v1212_v0 }
 0x15e   :  { %v1142_v54 = vpop.f32.mrf.mxu2  ;;  %v1155_v55 = vpop.f32.mrf.mxu3  ;;  %1943 = vpow2.f32 %v1219_v62 }
 0x15f   :  { %v1143_v57 = vadd.f32 %v1142_v54, %v773_v51  ;;  %v1156_v58 = vadd.f32 %v1155_v55, %v774_v52  ;;  %v1118_v59 = vpop.f32.mrf.mxu0  ;;  %v1131_v60 = vpop.f32.mrf.mxu1 }
 0x161   :  { %v1213_v61 = vsub.f32 0.0, %v1143_v57  ;;  %v1214_v63 = vsub.f32 0.0, %v1156_v58 }
 0x163   :  { %v1223_v2 = vmul.f32 1.442695, %v1213_v61  ;;  %v1225_v5 = vmul.f32 1.442695, %v1214_v63 }
 0x164   :  { %v1944_v1 = vpop.eup %1943 }
 0x165   :  { %1945 = vpow2.f32 %v1223_v2  ;;  %v1235_v24 = vadd.f32 1.0, %v1944_v1 }
 0x166   :  { %v1144_v7 = vpop.f32.mrf.mxu2  ;;  %v1157_v8 = vpop.f32.mrf.mxu3  ;;  %1947 = vpow2.f32 %v1225_v5 }
 0x167   :  { %v1168_v10 = vpop.f32.mrf.mxu0  ;;  %v1181_v11 = vpop.f32.mrf.mxu1  ;;  %1949 = vpow2.f32 %v1221_v9 }
 0x168   :  { %v1169_v12 = vadd.f32 %v1168_v10, %v775_v3  ;;  %v1182_v13 = vadd.f32 %v1181_v11, %v776_v4 }
 0x16a   :  { %v1215_v14 = vsub.f32 0.0, %v1169_v12  ;;  %v1216_v15 = vsub.f32 0.0, %v1182_v13 }
 0x16b   :  { %v1946_v19 = vpop.eup %1945 }
 0x16c   :  { %v1227_v18 = vmul.f32 1.442695, %v1215_v14  ;;  %v1229_v20 = vmul.f32 1.442695, %v1216_v15  ;;  %v1948_v30 = vpop.eup %1947  ;;  %v1237_v31 = vadd.f32 1.0, %v1946_v19 }
 0x16d   :  { %v1950_v32 = vpop.eup %1949  ;;  %v1238_v34 = vadd.f32 1.0, %v1948_v30 }
 0x16e   :  { %v1194_v21 = vpop.f32.mrf.mxu2  ;;  %v1207_v22 = vpop.f32.mrf.mxu3  ;;  %1951 = vpow2.f32 %v1227_v18  ;;  %v1236_v37 = vadd.f32 1.0, %v1950_v32 }
 0x16f   :  { %v1195_v26 = vadd.f32 %v1194_v21, %v777_v16  ;;  %v1208_v27 = vadd.f32 %v1207_v22, %v778_v17  ;;  %v1170_v28 = vpop.f32.mrf.mxu0  ;;  %v1183_v29 = vpop.f32.mrf.mxu1  ;;  %1953 = vpow2.f32 %v1229_v20 }
 0x170   :  { %1955 = vrcp.f32 %v1235_v24 }
 0x171   :  { %v1217_v6 = vsub.f32 0.0, %v1195_v26  ;;  %v1218_v33 = vsub.f32 0.0, %v1208_v27  ;;  %1957 = vrcp.f32 %v1237_v31 }
 0x173   :  { %v1231_v35 = vmul.f32 1.442695, %v1217_v6  ;;  %v1233_v36 = vmul.f32 1.442695, %v1218_v33 }
 0x174   :  { %v1952_v38 = vpop.eup %1951 }
 0x175   :  { %1959 = vpow2.f32 %v1231_v35  ;;  %v1954_v41 = vpop.eup %1953  ;;  %v1239_v42 = vadd.f32 1.0, %v1952_v38 }
 0x176   :  { %1961 = vpow2.f32 %v1233_v36  ;;  %v1196_v39 = vpop.f32.mrf.mxu2  ;;  %v1209_v40 = vpop.f32.mrf.mxu3  ;;  %v1240_v43 = vadd.f32 1.0, %v1954_v41 }
 0x177   :  { %1963 = vrcp.f32 %v1238_v34  ;;  %v1956_v23 = vpop.eup %1955 }
 0x178   :  { %1965 = vrcp.f32 %v1236_v37  ;;  %v1958_v44 = vpop.eup %1957 }
 0x179   :  { %1967 = vrcp.f32 %v1239_v42 }
 0x17a   :  { %1969 = vrcp.f32 %v1240_v43 }
 0x17b   :  { %v1960_v45 = vpop.eup %1959 }
 0x17c   :  { %v1962_v25 = vpop.eup %1961  ;;  %v1241_v46 = vadd.f32 1.0, %v1960_v45 }
 0x17d   :  { %v1964_v47 = vpop.eup %1963  ;;  %v1242_v48 = vadd.f32 1.0, %v1962_v25 }
 0x17e   :  { %v1966_v49 = vpop.eup %1965  ;;  %1971 = vrcp.f32 %v1241_v46  ;;  %v1252_v52 = vpack.c.bf16 %v1964_v47, %v1958_v44 }
 0x17f   :  { %v1968_v50 = vpop.eup %1967  ;;  %1973 = vrcp.f32 %v1242_v48  ;;  %v1251_v53 = vpack.c.bf16 %v1966_v49, %v1956_v23 }
 0x180   :  { %v1970_v51 = vpop.eup %1969  ;;  %v1260_v56 = vrot.slane %v1252_v52, 6  ;;  %v1261_v57 = vrot.slane %v1252_v52, 1 }
 0x181   :  { %v1253_v54 = vpack.c.bf16 %v1970_v51, %v1968_v50  ;;  %v1259_v59 = vrot.slane %v1251_v53, 3 }
 0x182   :  { %v1273_v63 = vsel %vm1270_vm0, %v1260_v56, %v1261_v57 }
 0x183   :  { %v1262_v60 = vrot.slane %v1253_v54, 4  ;;  %v1263_v61 = vrot.slane %v1253_v54, 7  ;;  %v1269_v3 = vsel %vm1266_vm1, %v1251_v53, %v1259_v59 }
 0x184   :  { %v1972_v55 = vpop.eup %1971  ;;  %v1275_v7 = vsel %vm1274_vm2, %v1269_v3, %v1273_v63 }
 0x185   :  { %v1974_v58 = vpop.eup %1973  ;;  %v1279_v4 = vsel %vm1276_vm3, %v1262_v60, %v1263_v61 }
 0x186   :  { %v1254_v62 = vpack.c.bf16 %v1974_v58, %v1972_v55 }
 0x188   :  { %v1264_v0 = vrot.slane %v1254_v62, 2  ;;  %v1265_v2 = vrot.slane %v1254_v62, 5 }
 0x18a   :  { %v1283_v5 = vsel %vm1280_vm4, %v1264_v0, %v1265_v2 }
 0x18b   :  { %v1285_v8 = vsel %vm1284_vm5, %v1279_v4, %v1283_v5 }
 0x18c   :  { %v1287_v9 = vsel %vm1286_vm6, %v1275_v7, %v1285_v8 }
 0x18d   :  { %1289 = vst [vmem:[%s2101_s5] sm:$0xff] %v1287_v9 }
 0x18e   :  { %1294 = vsyncpa [#allocation3], 1 }
 0x18f   :  { %1295 = vsyncpa [#allocation5], 1 }

</bundles_post_ra>
